<compile_context>
chip_gen: v7x
topology: tpu7x:2x2x1
jax: 0.10.0
libtpu: 0.0.40
codegen_flags: <defaults>
</compile_context>

<pallas_src>
import functools

import numpy as np
import jax
import jax.numpy as jnp
from jax.experimental import pallas as pl
from jax.experimental.pallas import tpu as pltpu

TILE_R_MAX = 4096   # residue rows per grid step (multiple of 32)
EPS = 1e-8


def _round_up(x, m):
    return ((x + m - 1) // m) * m


def _sc_dev_kernel(pred_ref, act_ref, mask_ref, expand_ref, num_ref, den_ref,
                   *, p, tile_r, total_rows):
    """One grid step: tile_r residues -> per-block (num, den) partial sums."""
    # Row-validity mask: kills rows past the true end of the array in the last
    # (possibly partial) block.  Garbage data in those rows only ever reaches
    # the accumulation through `valid`, which is forced False here, and the
    # final jnp.where(valid, ., 0.) — keep that where; NaN*0 is NaN otherwise.
    row0 = pl.program_id(0) * tile_r
    sub = jax.lax.broadcasted_iota(jnp.int32, (tile_r, 1), 0)
    row_ok = (row0 + sub) < total_rows                       # (tile_r, 1) bool

    # Mask arrives as int8 (HBM-cheap); upcast in VMEM, zero out-of-range rows.
    m33 = jnp.where(row_ok, mask_ref[...].astype(jnp.float32), 0.0)  # (tile_r,33)
    cnt = jnp.sum(m33, axis=-1, keepdims=True)                # atoms per residue
    denom = jnp.maximum(cnt, 1.0)                             # clamp(min=1)
    valid = cnt > 0.0                                         # residue_mask

    # m99 = m33 @ expand replicates each atom's mask across its xyz triplet.
    # All entries are exactly 0/1 with f32 accumulation -> exact on the MXU at
    # any matmul precision; the MXU is otherwise idle in this kernel.
    m99 = jnp.dot(m33, expand_ref[...],
                  preferred_element_type=jnp.float32)         # (tile_r, 99)

    # Coords arrive in native dtype; upcast in VMEM (no extra HBM pass).
    d = pred_ref[...].astype(jnp.float32) - act_ref[...].astype(jnp.float32)
    d2 = d * d                                                # (tile_r, 99)

    if p == 2:
        # sum over (atom,xyz) of masked squared deviation == sum(d2 * m99).
        # Exact-f32 lane reduce (see header note on why this stays off the MXU).
        per_res_mse = jnp.sum(d2 * m99, axis=-1, keepdims=True) / denom
        per_res = jnp.sqrt(per_res_mse + EPS)                 # (tile_r, 1)
    elif p == 1:
        per_res = jnp.sum(jnp.sqrt(d2 + EPS) * m99, axis=-1,
                          keepdims=True) / denom              # (tile_r, 1)
    else:
        raise NotImplementedError(f"p={p}")

    # Row reduce = VPU adds across vregs + one small sublane reduce.
    num_part = jnp.sum(jnp.where(valid, per_res, 0.0), axis=0, keepdims=True)
    den_part = jnp.sum(valid.astype(jnp.float32), axis=0, keepdims=True)

    # Lane-dense (1, 8, 128) stores (unmasked vst); wrapper reads [:, 0, 0].
    num_ref[...] = jnp.broadcast_to(num_part, num_ref.shape)
    den_ref[...] = jnp.broadcast_to(den_part, den_ref.shape)


def side_chain_deviation_loss(predicted_coords, actual_coords, sc_atom_mask, p=2):
    """predicted_coords/actual_coords: (b, n, 33, 3); sc_atom_mask: (b, n, 33) bool."""
    b, n, a, c = predicted_coords.shape
    assert a == 33 and c == 3
    r = b * n
    assert r > 0

    # Contiguous reshapes only; coords keep their native dtype (upcast happens
    # inside the kernel), mask is shipped as int8 to cut HBM bytes.
    pred = predicted_coords.reshape(r, a * c)                 # (R, 99)
    act = actual_coords.reshape(r, a * c)                     # (R, 99)
    msk = sc_atom_mask.reshape(r, a).astype(jnp.int8)         # (R, 33)

    # Only pad when the whole problem is smaller than one int8 sublane group
    # (R < 32); the copy is negligible there.  Larger ragged tails are handled
    # in-kernel via the row-index mask, never by padding/copying the arrays.
    rows = r
    if rows < 32:
        pad = 32 - rows
        pred = jnp.pad(pred, ((0, pad), (0, 0)))
        act = jnp.pad(act, ((0, pad), (0, 0)))
        msk = jnp.pad(msk, ((0, pad), (0, 0)))
        rows = 32

    # Tile choice: even, balanced block count (so v7x's two TensorCores both get
    # work when the grid axis is split), multiple of 32 (int8 sublane tiling),
    # capped at TILE_R_MAX for VMEM.
    pairs = -(-rows // (2 * TILE_R_MAX))                      # blocks per "half"
    tile_r = min(TILE_R_MAX, max(32, _round_up(-(-rows // (2 * pairs)), 32)))
    num_blocks = -(-rows // tile_r)                           # last may be partial

    # Constant (33, 99) expansion matrix: expand[a, j] = 1 iff j // 3 == a.
    # Hoisted out of the kernel body and streamed as a tiny per-step input.
    expand_np = np.zeros((33, 99), np.float32)
    expand_np[np.arange(99) // 3, np.arange(99)] = 1.0
    expand = jnp.asarray(expand_np)

    kernel = functools.partial(_sc_dev_kernel, p=p, tile_r=tile_r, total_rows=r)
    num, den = pl.pallas_call(
        kernel,
        out_shape=(jax.ShapeDtypeStruct((num_blocks, 8, 128), jnp.float32),
                   jax.ShapeDtypeStruct((num_blocks, 8, 128), jnp.float32)),
        grid_spec=pltpu.PrefetchScalarGridSpec(
            num_scalar_prefetch=0,
            grid=(num_blocks,),
            in_specs=[
                pl.BlockSpec((tile_r, 99), lambda i: (i, 0)),
                pl.BlockSpec((tile_r, 99), lambda i: (i, 0)),
                pl.BlockSpec((tile_r, 33), lambda i: (i, 0)),
                pl.BlockSpec((33, 99), lambda i: (0, 0)),
            ],
            out_specs=[
                pl.BlockSpec((1, 8, 128), lambda i: (i, 0, 0)),
                pl.BlockSpec((1, 8, 128), lambda i: (i, 0, 0)),
            ],
        ),
        compiler_params=pltpu.CompilerParams(
            # Each grid step writes its own partial block -> truly parallel axis
            # (v7x splits it across both TensorCores; harmless on v5e/v6e).
            dimension_semantics=("parallel",),
            # Double-buffered inputs (~10 MiB at tile_r=4096) + spilled f32
            # temporaries; 40 MiB is comfortable on all of v5e/v6e/v7x.
            vmem_limit_bytes=40 * 1024 * 1024,
        ),
    )(pred, act, msk, expand)

    # Trivial glue: sum the per-block partials and divide.  den == number of
    # valid residues; all-masked input yields NaN/Inf, matching torch.mean over
    # an empty selection in the reference module.
    num_total = jnp.sum(num[:, 0, 0])
    den_total = jnp.sum(den[:, 0, 0])
    return num_total / den_total


def _reference(pred, act, mask, p=2):
    """Pure-JAX reference mirroring the PyTorch module."""
    dev = jnp.square(pred - act)
    maskf = mask.astype(jnp.float32)
    residue_mask = jnp.any(mask, axis=-1)
    cnt = jnp.maximum(jnp.sum(maskf, axis=-1), 1.0)
    if p == 2:
        per_res_mse = jnp.sum(jnp.sum(dev, axis=-1) * maskf, axis=-1) / cnt
        vals = jnp.sqrt(per_res_mse + EPS)
    elif p == 1:
        d = jnp.sum(jnp.sqrt(dev + EPS), axis=-1)
        vals = jnp.sum(d * maskf, axis=-1) / cnt
    else:
        raise NotImplementedError(p)
    nvalid = jnp.sum(residue_mask.astype(jnp.float32))
    return jnp.sum(jnp.where(residue_mask, vals, 0.0)) / nvalid


if __name__ == "__main__":
    key = jax.random.PRNGKey(0)
    k1, k2, k3 = jax.random.split(key, 3)

    # Small case: R=18 -> padded to 32 rows, single block, fully-masked residue.
    batch, seq = 2, 9
    pred = jax.random.normal(k1, (batch, seq, 33, 3), dtype=jnp.float32)
    act = jax.random.normal(k2, (batch, seq, 33, 3), dtype=jnp.float32)
    mask = jax.random.bernoulli(k3, p=0.7, shape=(batch, seq, 33))
    mask = mask.at[0, 0, :].set(False)   # exercise the residue_mask path

    loss = jax.block_until_ready(side_chain_deviation_loss(pred, act, mask, p=2))
    ref = jax.block_until_ready(_reference(pred, act, mask, p=2))
    assert jnp.allclose(loss, ref, rtol=1e-5, atol=1e-5), (loss, ref)

    # p=1 variant.
    loss_p1 = jax.block_until_ready(side_chain_deviation_loss(pred, act, mask, p=1))
    ref_p1 = jax.block_until_ready(_reference(pred, act, mask, p=1))
    assert jnp.allclose(loss_p1, ref_p1, rtol=1e-5, atol=1e-5), (loss_p1, ref_p1)

    # Multi-block case: R=80 -> tile_r=64, 2 balanced blocks, ragged last block.
    k4, k5, k6 = jax.random.split(jax.random.PRNGKey(1), 3)
    b2, s2 = 2, 40
    pred2 = jax.random.normal(k4, (b2, s2, 33, 3), dtype=jnp.float32)
    act2 = jax.random.normal(k5, (b2, s2, 33, 3), dtype=jnp.float32)
    mask2 = jax.random.bernoulli(k6, p=0.6, shape=(b2, s2, 33))
    loss2 = jax.block_until_ready(side_chain_deviation_loss(pred2, act2, mask2, p=2))
    ref2 = jax.block_until_ready(_reference(pred2, act2, mask2, p=2))
    assert jnp.allclose(loss2, ref2, rtol=1e-5, atol=1e-5), (loss2, ref2)

    print("KERNEL_OK")
</pallas_src>

<mosaic_0001>
module attributes {stable_mosaic.version = 11 : i64} {
  func.func @_sc_dev_kernel(%arg0: i32, %arg1: memref<32x99xf32, #tpu.memory_space<vmem>>, %arg2: memref<32x99xf32, #tpu.memory_space<vmem>>, %arg3: memref<32x33xi8, #tpu.memory_space<vmem>>, %arg4: memref<33x99xf32, #tpu.memory_space<vmem>>, %arg5: memref<1x8x128xf32, #tpu.memory_space<vmem>>, %arg6: memref<1x8x128xf32, #tpu.memory_space<vmem>>) attributes {dimension_semantics = [#tpu.dimension_semantics<parallel>], iteration_bounds = array<i64: 1>, scalar_prefetch = 0 : i64, scratch_operands = 0 : i64, tpu.core_type = #tpu.core_type<tc>, window_params = [{transform_indices = @transform_0, window_bounds = array<i64: 32, 99>}, {transform_indices = @transform_1, window_bounds = array<i64: 32, 99>}, {transform_indices = @transform_2, window_bounds = array<i64: 32, 33>}, {pipeline_mode = #tpu.pipeline_mode<synchronous>, transform_indices = @transform_3, window_bounds = array<i64: 33, 99>}, {transform_indices = @transform_4, window_bounds = array<i64: 1, 8, 128>}, {transform_indices = @transform_5, window_bounds = array<i64: 1, 8, 128>}]} {
    %c32_i32 = arith.constant 32 : i32
    %0 = arith.muli %arg0, %c32_i32 : i32
    %1 = tpu.iota {dimensions = array<i32: 0>} : vector<32x1xi32>
    %2 = vector.broadcast %0 : i32 to vector<32x1xi32>
    %3 = arith.addi %2, %1 : vector<32x1xi32>
    %c18_i32 = arith.constant 18 : i32
    %4 = vector.broadcast %c18_i32 : i32 to vector<32x1xi32>
    %5 = arith.cmpi slt, %3, %4 : vector<32x1xi32>
    %c0 = arith.constant 0 : index
    %c0_0 = arith.constant 0 : index
    %6 = vector.load %arg3[%c0, %c0_0] : memref<32x33xi8, #tpu.memory_space<vmem>>, vector<32x33xi8>
    %7 = arith.sitofp %6 : vector<32x33xi8> to vector<32x33xf32>
    %cst = arith.constant 0.000000e+00 : f32
    %8 = vector.shape_cast %5 : vector<32x1xi1> to vector<32x1xi1>
    %9 = vector.broadcast %8 : vector<32x1xi1> to vector<32x33xi1>
    %10 = vector.broadcast %cst : f32 to vector<32x33xf32>
    %11 = arith.select %9, %7, %10 : vector<32x33xi1>, vector<32x33xf32>
    %cst_1 = arith.constant dense<0.000000e+00> : vector<32xf32>
    %12 = vector.multi_reduction <add>, %11, %cst_1 [1] : vector<32x33xf32> to vector<32xf32>
    %13 = vector.shape_cast %12 : vector<32xf32> to vector<32x1xf32>
    %cst_2 = arith.constant 1.000000e+00 : f32
    %14 = vector.broadcast %cst_2 : f32 to vector<32x1xf32>
    %15 = arith.maximumf %13, %14 : vector<32x1xf32>
    %cst_3 = arith.constant 0.000000e+00 : f32
    %16 = vector.broadcast %cst_3 : f32 to vector<32x1xf32>
    %17 = arith.cmpf ogt, %13, %16 : vector<32x1xf32>
    %c0_4 = arith.constant 0 : index
    %c0_5 = arith.constant 0 : index
    %18 = vector.load %arg4[%c0_4, %c0_5] : memref<33x99xf32, #tpu.memory_space<vmem>>, vector<33x99xf32>
    %cst_6 = arith.constant dense<0.000000e+00> : vector<32x99xf32>
    %19 = tpu.matmul %11, %18, %cst_6 {dimension_numbers = #tpu.dot_dimension_numbers<[1], [0], [0], [1], [0, 0, 1, 1], [], []>} : vector<32x33xf32>, vector<33x99xf32>, vector<32x99xf32> -> vector<32x99xf32>
    %c0_7 = arith.constant 0 : index
    %c0_8 = arith.constant 0 : index
    %20 = vector.load %arg1[%c0_7, %c0_8] : memref<32x99xf32, #tpu.memory_space<vmem>>, vector<32x99xf32>
    %c0_9 = arith.constant 0 : index
    %c0_10 = arith.constant 0 : index
    %21 = vector.load %arg2[%c0_9, %c0_10] : memref<32x99xf32, #tpu.memory_space<vmem>>, vector<32x99xf32>
    %22 = arith.subf %20, %21 : vector<32x99xf32>
    %23 = arith.mulf %22, %22 : vector<32x99xf32>
    %24 = arith.mulf %23, %19 : vector<32x99xf32>
    %cst_11 = arith.constant dense<0.000000e+00> : vector<32xf32>
    %25 = vector.multi_reduction <add>, %24, %cst_11 [1] : vector<32x99xf32> to vector<32xf32>
    %26 = vector.shape_cast %25 : vector<32xf32> to vector<32x1xf32>
    %27 = arith.divf %26, %15 : vector<32x1xf32>
    %cst_12 = arith.constant 9.99999993E-9 : f32
    %28 = vector.broadcast %cst_12 : f32 to vector<32x1xf32>
    %29 = arith.addf %27, %28 : vector<32x1xf32>
    %30 = math.sqrt %29 : vector<32x1xf32>
    %cst_13 = arith.constant 0.000000e+00 : f32
    %31 = vector.broadcast %cst_13 : f32 to vector<32x1xf32>
    %32 = arith.select %17, %30, %31 : vector<32x1xi1>, vector<32x1xf32>
    %cst_14 = arith.constant dense<0.000000e+00> : vector<1xf32>
    %33 = vector.multi_reduction <add>, %32, %cst_14 [0] : vector<32x1xf32> to vector<1xf32>
    %34 = vector.shape_cast %33 : vector<1xf32> to vector<1x1xf32>
    %35 = arith.extui %17 : vector<32x1xi1> to vector<32x1xi32>
    %36 = arith.sitofp %35 : vector<32x1xi32> to vector<32x1xf32>
    %cst_15 = arith.constant dense<0.000000e+00> : vector<1xf32>
    %37 = vector.multi_reduction <add>, %36, %cst_15 [0] : vector<32x1xf32> to vector<1xf32>
    %38 = vector.shape_cast %37 : vector<1xf32> to vector<1x1xf32>
    %39 = vector.shape_cast %34 : vector<1x1xf32> to vector<1x1x1xf32>
    %40 = vector.broadcast %39 : vector<1x1x1xf32> to vector<1x8x128xf32>
    %c0_16 = arith.constant 0 : index
    %c0_17 = arith.constant 0 : index
    %c0_18 = arith.constant 0 : index
    %41 = vector.load %arg5[%c0_16, %c0_17, %c0_18] : memref<1x8x128xf32, #tpu.memory_space<vmem>>, vector<1x8x128xf32>
    tpu.vector_store %arg5[%c0_16, %c0_17, %c0_18], %40 {strides = array<i32>} : memref<1x8x128xf32, #tpu.memory_space<vmem>>, vector<1x8x128xf32>,
    %42 = vector.shape_cast %38 : vector<1x1xf32> to vector<1x1x1xf32>
    %43 = vector.broadcast %42 : vector<1x1x1xf32> to vector<1x8x128xf32>
    %c0_19 = arith.constant 0 : index
    %c0_20 = arith.constant 0 : index
    %c0_21 = arith.constant 0 : index
    %44 = vector.load %arg6[%c0_19, %c0_20, %c0_21] : memref<1x8x128xf32, #tpu.memory_space<vmem>>, vector<1x8x128xf32>
    tpu.vector_store %arg6[%c0_19, %c0_20, %c0_21], %43 {strides = array<i32>} : memref<1x8x128xf32, #tpu.memory_space<vmem>>, vector<1x8x128xf32>,
    return
  }
  func.func @transform_0(%arg0: i32) -> (i32, i32) {
    %c0_i32 = arith.constant 0 : i32
    %c0_i32_0 = arith.constant 0 : i32
    return %arg0, %c0_i32 : i32, i32
  }
  func.func @transform_1(%arg0: i32) -> (i32, i32) {
    %c0_i32 = arith.constant 0 : i32
    %c0_i32_0 = arith.constant 0 : i32
    return %arg0, %c0_i32 : i32, i32
  }
  func.func @transform_2(%arg0: i32) -> (i32, i32) {
    %c0_i32 = arith.constant 0 : i32
    %c0_i32_0 = arith.constant 0 : i32
    return %arg0, %c0_i32 : i32, i32
  }
  func.func @transform_3(%arg0: i32) -> (i32, i32) {
    %c0_i32 = arith.constant 0 : i32
    %c0_i32_0 = arith.constant 0 : i32
    %c0_i32_1 = arith.constant 0 : i32
    return %c0_i32, %c0_i32_0 : i32, i32
  }
  func.func @transform_4(%arg0: i32) -> (i32, i32, i32) {
    %c0_i32 = arith.constant 0 : i32
    %c0_i32_0 = arith.constant 0 : i32
    %c0_i32_1 = arith.constant 0 : i32
    return %arg0, %c0_i32, %c0_i32_0 : i32, i32, i32
  }
  func.func @transform_5(%arg0: i32) -> (i32, i32, i32) {
    %c0_i32 = arith.constant 0 : i32
    %c0_i32_0 = arith.constant 0 : i32
    %c0_i32_1 = arith.constant 0 : i32
    return %arg0, %c0_i32, %c0_i32_0 : i32, i32, i32
  }
}

</mosaic_0001>

<bundles_post_ra>
// kernel: tpu_custom_call.1
= control target key start
LH: loop header
LB: loop body
LE: loop exit
PB: predicated region body
PF: predicated region fallthrough
CT: control target
= control target key end

     0   :  { %11 = vsyncpa [#allocation3], 0  ;;  %s763_s0 = inlined_call_operand.hbm [shape: f32[32,99], index: 0, kind: input, shape index: {}]   ;;  %s764_s1 = inlined_call_operand.hbm [shape: f32[32,99], index: 1, kind: input, shape index: {}]   ;;  %s765_s2 = inlined_call_operand.hbm [shape: s8[32,33], index: 2, kind: input, shape index: {}]   ;;  %s766_s3 = inlined_call_operand.hbm [shape: f32[33,99], index: 3, kind: input, shape index: {}]   ;;  %s767_s4 = inlined_call_operand.hbm [shape: f32[1,8,128], index: 4, kind: output, shape index: {0}]   ;;  %s768_s5 = inlined_call_operand.hbm [shape: f32[1,8,128], index: 5, kind: output, shape index: {1}]  }
   0x1   :  { %12 = vsyncpa [#allocation6], 0 }
   0x2   :  { %13 = vsyncpa [#allocation9], 0 }
   0x3   :  { %14 = vsyncpa [#allocation4], 0 }
   0x4   :  { %15 = vsyncpa [#allocation12], 0  ;;  %s587_s18 = smov [#allocation5]   ;;  %s588_s20 = smov [#allocation2]  }
   0x5   :  { %s33_s19 = sshll.u32 %s587_s18, 4  ;;  %s21_s21 = sshll.u32 %s588_s20, 4  ;;  %s34_s19 = int_to_ptr.vmem [resolvable:$true] %s33_s19  ;;  %s626_s21 = int_to_ptr.vmem [resolvable:$true] %s21_s21 }
   0x6   :  { %s445_s24 = scalar_lea.hbm %s764_s1, 512 }
   0x7   :  { %p446_p0 = scmp.ne.s32.totalorder %s764_s1, %s445_s24  ;;  %p449_p1 = scmp.lt.u32.totalorder %s445_s24, %s764_s1 }
   0x9   :  { %p451_p2 = pnand %p449_p1, %p446_p0 }
   0xb   :  { %454 = shalt.err (!%p451_p2)
}
   0xc   :  { %s455_s29 = scalar_lea.vmem %s34_s19, 512  ;;  %p460_p4 = scmp.lt.s32.totalorder %s34_s19, %s34_s19 }
   0xd   :  { %p456_p3 = scmp.ne.s32.totalorder %s34_s19, %s455_s29  ;;  %p461_p5 = scmp.lt.s32.totalorder %s455_s29, %s455_s29 }
   0xf   :  { %p462_p6 = por %p461_p5, %p460_p4 }
  0x11   :  { %p463_p7 = pnand %p462_p6, %p456_p3 }
  0x13   :  { %466 = shalt.err (!%p463_p7)
}
  0x14   :  { %s589_s30 = smov 128   ;;  %s590_s6 = smov 8  }
  0x15   :  { %39 = dma.hbm_to_vmem [thread:$0]  %s764_s1, 512, %s34_s19, [#allocation6], %s589_s30, %s589_s30, %s590_s6  }
  0x16   :  { %s467_s11 = scalar_lea.hbm %s763_s0, 512 }
  0x17   :  { %p468_p8 = scmp.ne.s32.totalorder %s763_s0, %s467_s11  ;;  %p471_p9 = scmp.lt.u32.totalorder %s467_s11, %s763_s0 }
  0x19   :  { %p473_p10 = pnand %p471_p9, %p468_p8 }
  0x1b   :  { %476 = shalt.err (!%p473_p10)
}
  0x1c   :  { %s477_s16 = scalar_lea.vmem %s626_s21, 512  ;;  %p482_p12 = scmp.lt.s32.totalorder %s626_s21, %s626_s21 }
  0x1d   :  { %p478_p11 = scmp.ne.s32.totalorder %s626_s21, %s477_s16  ;;  %p483_p13 = scmp.lt.s32.totalorder %s477_s16, %s477_s16 }
  0x1f   :  { %p484_p0 = por %p483_p13, %p482_p12 }
  0x21   :  { %p485_p1 = pnand %p484_p0, %p478_p11 }
  0x23   :  { %488 = shalt.err (!%p485_p1)
}
  0x24   :  { %27 = dma.hbm_to_vmem [thread:$0]  %s763_s0, 512, %s626_s21, [#allocation3], %s589_s30, %s589_s30, %s590_s6  }
  0x25   :  { %s591_s18 = smov [#allocation7]   ;;  %s592_s20 = smov [#allocation8]  }
  0x26   :  { %s46_s19 = sshll.u32 %s591_s18, 4  ;;  %s55_s22 = sshll.u32 %s592_s20, 4  ;;  %s47_s19 = int_to_ptr.vmem [resolvable:$true] %s46_s19  ;;  %s663_s22 = int_to_ptr.vmem [resolvable:$true] %s55_s22 }
  0x27   :  { %s489_s25 = scalar_lea.hbm %s765_s2, 128 }
  0x28   :  { %p490_p2 = scmp.ne.s32.totalorder %s765_s2, %s489_s25  ;;  %p493_p3 = scmp.lt.u32.totalorder %s489_s25, %s765_s2 }
  0x2a   :  { %p495_p4 = pnand %p493_p3, %p490_p2 }
  0x2c   :  { %498 = shalt.err (!%p495_p4)
}
  0x2d   :  { %s499_s0 = scalar_lea.vmem %s47_s19, 128  ;;  %p504_p6 = scmp.lt.s32.totalorder %s47_s19, %s47_s19 }
  0x2e   :  { %p500_p5 = scmp.ne.s32.totalorder %s47_s19, %s499_s0  ;;  %p505_p7 = scmp.lt.s32.totalorder %s499_s0, %s499_s0 }
  0x30   :  { %p506_p8 = por %p505_p7, %p504_p6 }
  0x32   :  { %p507_p9 = pnand %p506_p8, %p500_p5 }
  0x34   :  { %510 = shalt.err (!%p507_p9)
}
  0x35   :  { %49 = dma.hbm_to_vmem [thread:$0]  %s765_s2, 128, %s47_s19, [#allocation6]  }
  0x36   :  { %s511_s10 = scalar_lea.hbm %s766_s3, 640 }
  0x37   :  { %p512_p10 = scmp.ne.s32.totalorder %s766_s3, %s511_s10  ;;  %p515_p11 = scmp.lt.u32.totalorder %s511_s10, %s766_s3 }
  0x39   :  { %p517_p12 = pnand %p515_p11, %p512_p10 }
  0x3b   :  { %520 = shalt.err (!%p517_p12)
}
  0x3c   :  { %s521_s15 = scalar_lea.vmem %s663_s22, 640  ;;  %p526_p0 = scmp.lt.s32.totalorder %s663_s22, %s663_s22 }
  0x3d   :  { %p522_p13 = scmp.ne.s32.totalorder %s663_s22, %s521_s15  ;;  %p527_p1 = scmp.lt.s32.totalorder %s521_s15, %s521_s15 }
  0x3f   :  { %p528_p2 = por %p527_p1, %p526_p0 }
  0x41   :  { %p529_p3 = pnand %p528_p2, %p522_p13 }
  0x43   :  { %532 = shalt.err (!%p529_p3)
}
  0x44   :  { %61 = dma.hbm_to_vmem [thread:$0]  %s766_s3, 640, %s663_s22, [#allocation9], %s589_s30, %s589_s30, %s590_s6  }
  0x45   :  { %577 = dma.done.wait [#allocation3], 512  }
  0x46   :  { %578 = vsyncadd [#allocation3], 4294966784 }
  0x47   :  { %579 = dma.done.wait [#allocation6], 640  }
  0x48   :  { %580 = vsyncadd [#allocation6], 4294966656 }
  0x49   :  { %581 = dma.done.wait [#allocation9], 640  }
  0x4a   :  { %582 = vsyncadd [#allocation9], 4294966656  ;;  %v75_v0 = vlaneseq  ;;  %v131_v3 = vld [vmem:[#allocation8] sm:$0xff]  ;;  %v132_v4 = vld [vmem:[#allocation8 + $0x8] sm:$0xff]  ;;  %vm110_vm0 = vcmask 269312   ;;  %vm148_vm2 = vcmask 1040384  }
  0x4b   :  { %v133_v5 = vld [vmem:[#allocation8 + $0x10] sm:$0xff]  ;;  %v406_v6 = vpack.c.bf16 %v132_v4, %v131_v3  ;;  %v134_v7 = vld [vmem:[#allocation8 + $0x18] sm:$0xff]  ;;  %v135_v15 = vld [vmem:[#allocation8 + $0x20] sm:$0x1]  ;;  %v593_v21 = vmov 0.0   ;;  %vm257_vm7 = vcmask 809984  }
  0x4c   :  { %v76_v1 = vshrl.u32 %v75_v0, 7  ;;  %v89_v8 = vld [vmem:[#allocation7] sm:$0xff]  ;;  %v410_v9 = vpack.c.bf16 %v134_v7, %v133_v5  ;;  %v238_v25 = vld [vmem:[#allocation2 + $0x8] sm:$0xff]  ;;  %v240_v30 = vld [vmem:[#allocation2 + $0x18] sm:$0xff]  ;;  %s594_s3 = smov [#allocation11]  }
  0x4d   :  { %v90_v10 = vunpack.c.0.s8 %v89_v8  ;;  %v91_v11 = vunpack.c.1.s8 %v89_v8  ;;  %v92_v12 = vunpack.c.2.s8 %v89_v8  ;;  %407 = vmatprep.subr.bf16.mxu0 %v406_v6  ;;  %414 = vmatprep.subr.bf16.mxu1 %v406_v6  ;;  %v242_v26 = vld [vmem:[#allocation5 + $0x8] sm:$0xff]  ;;  %v237_v29 = vld [vmem:[#allocation2] sm:$0xff]  ;;  %v244_v31 = vld [vmem:[#allocation5 + $0x18] sm:$0xff]  ;;  %s358_s30 = sshll.u32 %s594_s3, 4  ;;  %s359_s30 = int_to_ptr.vmem [resolvable:$true] %s358_s30 }
  0x4e   :  { %v78_v2 = vadd.s32 16, %v76_v1  ;;  %409 = vmatpush3.bf16.msra.mxu0 %v406_v6  ;;  %417 = vmatpush3.bf16.msra.mxu1 %v406_v6  ;;  %v241_v32 = vld [vmem:[#allocation5] sm:$0xff]  ;;  %v239_v33 = vld [vmem:[#allocation2 + $0x10] sm:$0xff]  ;;  %v246_v37 = vsub.f32 %v238_v25, %v242_v26  ;;  %v248_v38 = vsub.f32 %v240_v30, %v244_v31  ;;  %s533_s6 = scalar_lea.vmem %s359_s30, 128  ;;  %p538_p5 = scmp.lt.s32.totalorder %s359_s30, %s359_s30 }
  0x4f   :  { %v94_v13 = vcvt.s32.f32 %v90_v10  ;;  %v96_v14 = vcvt.s32.f32 %v92_v12  ;;  %411 = vmatprep.subr.bf16.mxu0 %v410_v9  ;;  %415 = vmatprep.subr.bf16.mxu1 %v410_v9  ;;  %v95_v16 = vcvt.s32.f32 %v91_v11  ;;  %v243_v34 = vld [vmem:[#allocation5 + $0x10] sm:$0xff]  ;;  %v245_v40 = vsub.f32 %v237_v29, %v241_v32  ;;  %p534_p4 = scmp.ne.s32.totalorder %s359_s30, %s533_s6  ;;  %p539_p6 = scmp.lt.s32.totalorder %s533_s6, %s533_s6 }
  0x50   :  { %vm87_vm1 = vcmp.lt.s32.totalorder %v78_v2, 18  ;;  %v247_v41 = vsub.f32 %v239_v33, %v243_v34  ;;  %v250_v43 = vmul.f32 %v246_v37, %v246_v37  ;;  %v252_v44 = vmul.f32 %v248_v38, %v248_v38 }
  0x51   :  { %400 = vmatprep.mubr.msk.f32.mxu0 %vm110_vm0, %v94_v13  ;;  %v108_v17 = vsel %vm87_vm1, %v96_v14, 0.0  ;;  %v111_v18 = vsel %vm110_vm0, %v94_v13, 0.0  ;;  %v114_v20 = vsel %vm110_vm0, %v95_v16, 0.0  ;;  %v249_v46 = vmul.f32 %v245_v40, %v245_v40  ;;  %p540_p7 = por %p539_p6, %p538_p5 }
  0x52   :  { %403 = vmatprep.mubr.msk.f32.mxu1 %vm110_vm0, %v108_v17  ;;  %112 = vadd.xlane.f32.xlu0 %v111_v18  ;;  %v117_v19 = vsel %vm110_vm0, %v108_v17, 0.0  ;;  %v251_v47 = vmul.f32 %v247_v41, %v247_v41 }
  0x53   :  { %413 = vmatpush3.bf16.msra.mxu0 %v410_v9  ;;  %418 = vmatpush3.bf16.msra.mxu1 %v410_v9  ;;  %p541_p8 = pnand %p540_p7, %p534_p4 }
  0x54   :  { %398 = vmatprep.subr.msk.mxu0 %vm148_vm2, %v135_v15  ;;  %416 = vmatprep.subr.msk.mxu1 %vm148_vm2, %v135_v15 }
  0x55   :  { %118 = vadd.xlane.f32.xlu1 %v117_v19 }
  0x56   :  { %115 = vadd.xlane.f32.xlu0 %v114_v20 }
  0x57   :  { %399 = vmatpush3.msk.msra.mxu0 %vm148_vm2, %v135_v15  ;;  %419 = vmatpush3.msk.msra.mxu1 %vm148_vm2, %v135_v15 }
  0x58   :  { %401 = vmatmul.mubr.msk.f32.vlgmr.msra.gmra.mrb[0].mxu0 %vm110_vm0, %v95_v16  ;;  %404 = vmatmul.mubr.f32.vlgmr.msra.gmra.mrb[0].mxu1 %v593_v21 }
  0x59   :  { %121 = vadd.xlane.f32.xlu1 %v593_v21 }
  0xdf   :  { %v707_v22 = vpop.xlane.xlu0 %112 }
  0xe0   :  { %vm127_vm3 = vcmp.gt.f32.partialorder %v707_v22, 0.0 }
  0xe1   :  { %v377_v27 = vsel %vm127_vm3, 1.0, %v593_v21 }
  0xe2   :  { %v711_v24 = vpop.xlane.xlu1 %118 }
  0xe3   :  { %v709_v23 = vpop.xlane.xlu0 %115  ;;  %vm129_vm5 = vcmp.gt.f32.partialorder %v711_v24, 0.0 }
  0xe4   :  { %vm128_vm4 = vcmp.gt.f32.partialorder %v709_v23, 0.0  ;;  %v379_v39 = vsel %vm129_vm5, 1.0, %v593_v21 }
  0xe5   :  { %v378_v28 = vsel %vm128_vm4, 1.0, %v593_v21 }
  0xe6   :  { %v720_v35 = vpop.xlane.xlu1 %121  ;;  %v331_v36 = vadd.f32 %v378_v28, %v377_v27 }
  0xe7   :  { %vm130_vm6 = vcmp.gt.f32.partialorder %v720_v35, 0.0 }
  0xe8   :  { %v332_v42 = vadd.f32 %v379_v39, %v331_v36  ;;  %v380_v45 = vsel %vm130_vm6, 1.0, %v593_v21 }
  0xea   :  { %v333_v50 = vadd.f32 %v380_v45, %v332_v42 }
  0xec   :  { %v334_v59 = vrot.slane %v333_v50, 4 }
  0xee   :  { %v335_v62 = vadd.f32 %v334_v59, %v333_v50 }
  0xf0   :  { %v336_v63 = vrot.slane %v335_v62, 2 }
  0xf2   :  { %v337_v0 = vadd.f32 %v336_v63, %v335_v62 }
  0xf4   :  { %v338_v1 = vrot.slane %v337_v0, 1 }
  0xf6   :  { %v339_v2 = vadd.f32 %v338_v1, %v337_v0 }
  0xf8   :  { %341 = vst [vmem:[#allocation11] sm:$0xff] %v339_v2 }
 0x12b   :  { %v402_v48 = vpop.f32.mrb[0].mxu0  ;;  %v405_v49 = vpop.f32.mrb[0].mxu1 }
 0x12c   :  { %v254_v51 = vmul.f32 %v402_v48, %v250_v43  ;;  %v218_v52 = vpop.f32.mrb[1].mxu0  ;;  %v256_v53 = vmul.f32 %v405_v49, %v252_v44  ;;  %v228_v54 = vpop.f32.mrb[1].mxu1 }
 0x12d   :  { %v253_v55 = vmul.f32 %v249_v46, %v218_v52  ;;  %v255_v56 = vmul.f32 %v251_v47, %v228_v54 }
 0x12e   :  { %v261_v57 = vsel %vm257_vm7, %v254_v51, 0.0  ;;  %v267_v60 = vsel %vm257_vm7, %v256_v53, 0.0 }
 0x12f   :  { %262 = vadd.xlane.f32.xlu1 %v261_v57  ;;  %v258_v58 = vsel %vm257_vm7, %v253_v55, 0.0  ;;  %v264_v61 = vsel %vm257_vm7, %v255_v56, 0.0 }
 0x130   :  { %259 = vadd.xlane.f32.xlu0 %v258_v58 }
 0x133   :  { %268 = vadd.xlane.f32.xlu1 %v267_v60 }
 0x134   :  { %265 = vadd.xlane.f32.xlu0 %v264_v61 }
 0x135   :  { %544 = shalt.err (!%p541_p8)
}
 0x136   :  { %s545_s18 = scalar_lea.hbm %s768_s5, 128 }
 0x137   :  { %p546_p9 = scmp.ne.s32.totalorder %s768_s5, %s545_s18  ;;  %p549_p10 = scmp.lt.u32.totalorder %s545_s18, %s768_s5 }
 0x139   :  { %p551_p11 = pnand %p549_p10, %p546_p9 }
 0x13b   :  { %554 = shalt.err (!%p551_p11)
}
 0x13c   :  { %361 = dma.vmem_to_hbm [thread:$0]  %s359_s30, 128, %s768_s5, [#allocation12]   ;;  %v124_v3 = vmax.f32 %v709_v23, 1.0  ;;  %v123_v4 = vmax.f32 %v707_v22, 1.0  ;;  %v126_v5 = vmax.f32 %v720_v35, 1.0  ;;  %v125_v6 = vmax.f32 %v711_v24, 1.0 }
 0x13d   :  { %s595_s5 = smov [#allocation10]  }
 0x13e   :  { %429 = vrcp.f32 %v124_v3  ;;  %s348_s26 = sshll.u32 %s595_s5, 4  ;;  %s349_s26 = int_to_ptr.vmem [resolvable:$true] %s348_s26 }
 0x13f   :  { %431 = vrcp.f32 %v123_v4  ;;  %s555_s27 = scalar_lea.vmem %s349_s26, 128  ;;  %p560_p13 = scmp.lt.s32.totalorder %s349_s26, %s349_s26 }
 0x140   :  { %433 = vrcp.f32 %v126_v5  ;;  %p556_p12 = scmp.ne.s32.totalorder %s349_s26, %s555_s27  ;;  %p561_p0 = scmp.lt.s32.totalorder %s555_s27, %s555_s27 }
 0x141   :  { %435 = vrcp.f32 %v125_v6 }
 0x142   :  { %p562_p1 = por %p561_p0, %p560_p13 }
 0x144   :  { %p563_p2 = pnand %p562_p1, %p556_p12 }
 0x148   :  { %v430_v7 = vpop.eup %429 }
 0x149   :  { %v432_v9 = vpop.eup %431 }
 0x14a   :  { %v434_v12 = vpop.eup %433 }
 0x14b   :  { %v436_v17 = vpop.eup %435 }
 0x1bc   :  { %v263_v8 = vpop.xlane.xlu1 %262 }
 0x1bd   :  { %v273_v10 = vmul.f32 %v430_v7, %v263_v8  ;;  %v260_v11 = vpop.xlane.xlu0 %259 }
 0x1be   :  { %v271_v13 = vmul.f32 %v432_v9, %v260_v11 }
 0x1bf   :  { %v279_v14 = vadd.f32 1e-08, %v273_v10 }
 0x1c0   :  { %v278_v15 = vadd.f32 1e-08, %v271_v13  ;;  %v269_v16 = vpop.xlane.xlu1 %268 }
 0x1c1   :  { %437 = vrsqrt.f32 %v279_v14  ;;  %v277_v18 = vmul.f32 %v434_v12, %v269_v16  ;;  %v266_v19 = vpop.xlane.xlu0 %265  ;;  %vm291_vm8 = vcmp.eq.f32.partialorder %v279_v14, inf  ;;  %v294_v29 = vand.u32 2147483648, %v279_v14 }
 0x1c2   :  { %439 = vrsqrt.f32 %v278_v15  ;;  %v275_v20 = vmul.f32 %v436_v17, %v266_v19  ;;  %vm284_vm9 = vcmp.eq.f32.partialorder %v278_v15, inf  ;;  %v287_v31 = vand.u32 2147483648, %v278_v15 }
 0x1c3   :  { %v281_v21 = vadd.f32 1e-08, %v277_v18  ;;  %vm293_vm10 = vcmp.eq.f32.partialorder %v279_v14, 0.0  ;;  %vm286_vm11 = vcmp.eq.f32.partialorder %v278_v15, 0.0 }
 0x1c4   :  { %v280_v25 = vadd.f32 1e-08, %v275_v20 }
 0x1c5   :  { %441 = vrsqrt.f32 %v281_v21  ;;  %vm305_vm12 = vcmp.eq.f32.partialorder %v281_v21, inf  ;;  %v308_v45 = vand.u32 2147483648, %v281_v21  ;;  %vm307_vm15 = vcmp.eq.f32.partialorder %v281_v21, 0.0 }
 0x1c6   :  { %443 = vrsqrt.f32 %v280_v25  ;;  %vm298_vm13 = vcmp.eq.f32.partialorder %v280_v25, inf  ;;  %v301_v43 = vand.u32 2147483648, %v280_v25  ;;  %vm300_vm14 = vcmp.eq.f32.partialorder %v280_v25, 0.0 }
 0x1cb   :  { %v438_v26 = vpop.eup %437 }
 0x1cc   :  { %v440_v27 = vpop.eup %439  ;;  %v290_v28 = vmul.f32 %v438_v26, %v279_v14 }
 0x1cd   :  { %v283_v30 = vmul.f32 %v440_v27, %v278_v15 }
 0x1ce   :  { %v292_v32 = vsel %vm291_vm8, %v279_v14, %v290_v28 }
 0x1cf   :  { %v442_v33 = vpop.eup %441  ;;  %v285_v34 = vsel %vm284_vm9, %v278_v15, %v283_v30  ;;  %v295_v36 = vsel %vm293_vm10, %v294_v29, %v292_v32 }
 0x1d0   :  { %v444_v37 = vpop.eup %443  ;;  %v288_v38 = vsel %vm286_vm11, %v287_v31, %v285_v34  ;;  %v304_v39 = vmul.f32 %v442_v33, %v281_v21  ;;  %v311_v42 = vsel %vm128_vm4, %v295_v36, 0.0 }
 0x1d1   :  { %v297_v40 = vmul.f32 %v444_v37, %v280_v25  ;;  %v310_v41 = vsel %vm127_vm3, %v288_v38, 0.0 }
 0x1d2   :  { %v306_v44 = vsel %vm305_vm12, %v281_v21, %v304_v39  ;;  %v314_v49 = vadd.f32 %v311_v42, %v310_v41 }
 0x1d3   :  { %v299_v46 = vsel %vm298_vm13, %v280_v25, %v297_v40  ;;  %v309_v48 = vsel %vm307_vm15, %v308_v45, %v306_v44 }
 0x1d4   :  { %v302_v47 = vsel %vm300_vm14, %v301_v43, %v299_v46  ;;  %v313_v22 = vsel %vm130_vm6, %v309_v48, 0.0 }
 0x1d5   :  { %v312_v50 = vsel %vm129_vm5, %v302_v47, 0.0 }
 0x1d6   :  { %v315_v51 = vadd.f32 %v314_v49, %v312_v50 }
 0x1d8   :  { %v316_v52 = vadd.f32 %v315_v51, %v313_v22 }
 0x1da   :  { %v317_v23 = vrot.slane %v316_v52, 4 }
 0x1dc   :  { %v318_v53 = vadd.f32 %v317_v23, %v316_v52 }
 0x1de   :  { %v319_v54 = vrot.slane %v318_v53, 2 }
 0x1e0   :  { %v320_v55 = vadd.f32 %v319_v54, %v318_v53 }
 0x1e2   :  { %v321_v56 = vrot.slane %v320_v55, 1 }
 0x1e4   :  { %v322_v57 = vadd.f32 %v321_v56, %v320_v55 }
 0x1e6   :  { %340 = vst [vmem:[#allocation10] sm:$0xff] %v322_v57 }
 0x1e7   :  { %566 = shalt.err (!%p563_p2)
}
 0x1e8   :  { %s567_s0 = scalar_lea.hbm %s767_s4, 128 }
 0x1e9   :  { %p568_p3 = scmp.ne.s32.totalorder %s767_s4, %s567_s0  ;;  %p571_p4 = scmp.lt.u32.totalorder %s567_s0, %s767_s4 }
 0x1eb   :  { %p573_p5 = pnand %p571_p4, %p568_p3 }
 0x1ed   :  { %576 = shalt.err (!%p573_p5)
}
 0x1ee   :  { %351 = dma.vmem_to_hbm [thread:$0]  %s349_s26, 128, %s767_s4, [#allocation4]  }
 0x1ef   :  { %583 = dma.done.wait [#allocation4], 128  }
 0x1f0   :  { %584 = vsyncadd [#allocation4], 4294967168 }
 0x1f1   :  { %585 = dma.done.wait [#allocation12], 128  }
 0x1f2   :  { %586 = vsyncadd [#allocation12], 4294967168 }
 0x1f3   :  { %368 = vsyncpa [#allocation3], 1 }
 0x1f4   :  { %369 = vsyncpa [#allocation6], 1 }
 0x1f5   :  { %370 = vsyncpa [#allocation9], 1 }
 0x1f6   :  { %371 = vsyncpa [#allocation4], 1 }
 0x1f7   :  { %372 = vsyncpa [#allocation12], 1 }

</bundles_post_ra>
